<compile_context>
chip_gen: v7x
topology: tpu7x:2x2x1
jax: 0.10.0
libtpu: 0.0.40
codegen_flags: <defaults>
</compile_context>

<pallas_src>
import jax
import jax.numpy as jnp
from jax.experimental import pallas as pl
from jax.experimental.pallas import tpu as pltpu


def _i2l_tower_kernel(obs_ref, acs_ref,
                      obs_inv_ref, obs_shift_ref, acs_inv_ref, acs_shift_ref,
                      w1o_ref, w1a_ref, b1_ref, w2_ref, b2_ref, w3_ref,
                      out_ref):
    # obs_ref: [bm, ob_dim]   acs_ref: [bm, ac_dim]   (batch tile on sublanes)
    # *_inv / *_shift: [1, feat]    (inv_std and mean*inv_std, precomputed)
    # w1o: [ob_dim, h]  w1a: [ac_dim, h]  b1: [1, h]
    # w2:  [h, h]       b2: [1, h]        w3: [1, h]
    # out_ref: [bm, 1]
    obs_n = jnp.clip(obs_ref[...] * obs_inv_ref[...] - obs_shift_ref[...],
                     -10.0, 10.0)
    acs_n = jnp.clip(acs_ref[...] * acs_inv_ref[...] - acs_shift_ref[...],
                     -10.0, 10.0)

    # Layer 1: the concat([obs, acs]) @ W1.T is computed as the sum of two
    # partial matmuls (fuses the concat into the kernel).
    h1 = jnp.tanh(
        jnp.dot(obs_n, w1o_ref[...], preferred_element_type=jnp.float32)
        + jnp.dot(acs_n, w1a_ref[...], preferred_element_type=jnp.float32)
        + b1_ref[...])
    # Layer 2.
    h2 = jnp.tanh(
        jnp.dot(h1, w2_ref[...], preferred_element_type=jnp.float32)
        + b2_ref[...])
    # Layer 3: Linear(hidden, 1, bias=False) as multiply + lane reduction.
    out = jnp.sum(h2 * w3_ref[...], axis=1, keepdims=True)
    out_ref[...] = out.astype(out_ref.dtype)


def i2l_predict_rewards(obs, acs, rms_mean, rms_var, params, *, block_m=1024):
    """Normalize + 3-layer tanh MLP tower on (obs, acs) pairs.

    obs: [B, ob_dim], acs: [B, ac_dim] (raw, un-normalized — the kernel applies
    the input RunningMeanStd normalization with clipping, matching
    obs_batch_normalize(update_rms=False)).

    params use the PyTorch nn.Linear native layout:
      w1: [hidden, ob_dim+ac_dim], b1: [hidden]
      w2: [hidden, hidden],        b2: [hidden]
      w3: [1, hidden]              (no bias)
    Returns rewards of shape [B, 1] (float32).
    """
    B, ob_dim = obs.shape
    _, ac_dim = acs.shape
    in_dim = ob_dim + ac_dim
    hidden = params["w1"].shape[0]

    assert block_m % 128 == 0, "block_m must be a multiple of 128"
    # Don't over-pad tiny batches: cap the tile at the (128-rounded) batch.
    block_m = min(block_m, pl.cdiv(B, 128) * 128)
    B_pad = pl.cdiv(B, block_m) * block_m

    obs = obs.astype(jnp.float32)
    acs = acs.astype(jnp.float32)
    if B_pad != B:
        # Padded tail rows produce finite garbage and are sliced off below.
        obs = jnp.pad(obs, ((0, B_pad - B), (0, 0)))
        acs = jnp.pad(acs, ((0, B_pad - B), (0, 0)))

    # Fold normalization into one multiply-subtract: clip(x*inv_std - mean*inv_std).
    inv_std = jax.lax.rsqrt(rms_var.reshape(in_dim).astype(jnp.float32) + 1e-8)
    shift = rms_mean.reshape(in_dim).astype(jnp.float32) * inv_std
    obs_inv = inv_std[:ob_dim].reshape(1, ob_dim)
    acs_inv = inv_std[ob_dim:].reshape(1, ac_dim)
    obs_shift = shift[:ob_dim].reshape(1, ob_dim)
    acs_shift = shift[ob_dim:].reshape(1, ac_dim)

    # PyTorch nn.Linear weights are [out, in]; pre-transpose (tiny, one-time)
    # so the kernel runs plain [batch, in] @ [in, out] matmuls.  W1 is split
    # into its obs / acs columns to fuse the concat.
    w1 = params["w1"].astype(jnp.float32)                     # [hidden, in_dim]
    w1o_t = w1[:, :ob_dim].T                                  # [ob_dim, hidden]
    w1a_t = w1[:, ob_dim:].T                                  # [ac_dim, hidden]
    b1 = params["b1"].reshape(1, hidden).astype(jnp.float32)
    w2_t = params["w2"].astype(jnp.float32).T                 # [hidden, hidden]
    b2 = params["b2"].reshape(1, hidden).astype(jnp.float32)
    w3 = params["w3"].reshape(1, hidden).astype(jnp.float32)  # [1, hidden]

    full = lambda shape: pl.BlockSpec(shape, lambda i: (0, 0))

    out = pl.pallas_call(
        _i2l_tower_kernel,
        out_shape=jax.ShapeDtypeStruct((B_pad, 1), jnp.float32),
        grid_spec=pltpu.PrefetchScalarGridSpec(
            num_scalar_prefetch=0,
            grid=(B_pad // block_m,),
            in_specs=[
                pl.BlockSpec((block_m, ob_dim), lambda i: (i, 0)),  # obs tile
                pl.BlockSpec((block_m, ac_dim), lambda i: (i, 0)),  # acs tile
                full((1, ob_dim)),                                  # obs inv_std
                full((1, ob_dim)),                                  # obs mean*inv_std
                full((1, ac_dim)),                                  # acs inv_std
                full((1, ac_dim)),                                  # acs mean*inv_std
                full((ob_dim, hidden)),                             # W1 (obs cols, T)
                full((ac_dim, hidden)),                             # W1 (acs cols, T)
                full((1, hidden)),                                  # b1
                full((hidden, hidden)),                             # W2 (T)
                full((1, hidden)),                                  # b2
                full((1, hidden)),                                  # W3
            ],
            out_specs=pl.BlockSpec((block_m, 1), lambda i: (i, 0)),
        ),
        compiler_params=pltpu.CompilerParams(
            dimension_semantics=("parallel",)),
    )(obs, acs, obs_inv, obs_shift, acs_inv, acs_shift,
      w1o_t, w1a_t, b1, w2_t, b2, w3)

    # Drop padded tail rows; module reshapes this to [num_steps, num_procs, 1]
    # on the caller side.
    return out[:B]


def _reference(obs, acs, rms_mean, rms_var, params):
    sa = jnp.concatenate([obs, acs], axis=1)
    xn = jnp.clip((sa - rms_mean.reshape(1, -1))
                  / jnp.sqrt(rms_var.reshape(1, -1) + 1e-8), -10.0, 10.0)
    h1 = jnp.tanh(xn @ params["w1"].T + params["b1"])
    h2 = jnp.tanh(h1 @ params["w2"].T + params["b2"])
    return h2 @ params["w3"].T


if __name__ == "__main__":
    # Small shapes consistent with the module: ob_dim + ac_dim inputs, hidden MLP.
    ob_dim, ac_dim, hidden_dim = 16, 8, 32
    in_dim = ob_dim + ac_dim
    batch = 300  # deliberately NOT a multiple of the tile -> exercises padding

    key = jax.random.PRNGKey(0)
    k_obs, k_acs, k1, k2, k3, k4, k5, kv = jax.random.split(key, 8)

    obs = jax.random.normal(k_obs, (batch, ob_dim), dtype=jnp.float32)
    acs = jax.random.normal(k_acs, (batch, ac_dim), dtype=jnp.float32)

    # Deterministic synthetic parameters, PyTorch nn.Linear native layout [out, in].
    params = {
        "w1": jax.random.normal(k1, (hidden_dim, in_dim), jnp.float32) * 0.1,
        "b1": jax.random.normal(k2, (hidden_dim,), jnp.float32) * 0.01,
        "w2": jax.random.normal(k3, (hidden_dim, hidden_dim), jnp.float32) * 0.1,
        "b2": jax.random.normal(k4, (hidden_dim,), jnp.float32) * 0.01,
        "w3": jax.random.normal(k5, (1, hidden_dim), jnp.float32) * 0.1,
    }
    # RunningMeanStd(shape=input_dim) state (mean/var), deterministic.
    rms_mean = jnp.zeros((1, in_dim), jnp.float32)
    rms_var = jnp.abs(jax.random.normal(kv, (1, in_dim), jnp.float32)) + 0.5

    # block_m=128 here so the small demo runs a multi-step (3-tile) grid;
    # production batches use the default block_m=1024.
    out = i2l_predict_rewards(obs, acs, rms_mean, rms_var, params, block_m=128)
    out = jax.block_until_ready(out)

    ref = _reference(obs, acs, rms_mean, rms_var, params)
    assert out.shape == (batch, 1)
    assert jnp.allclose(out, ref, atol=1e-5, rtol=1e-5)

    print("KERNEL_OK")
</pallas_src>

<mosaic_0001>
module attributes {stable_mosaic.version = 11 : i64} {
  func.func @_i2l_tower_kernel(%arg0: i32, %arg1: memref<128x16xf32, #tpu.memory_space<vmem>>, %arg2: memref<128x8xf32, #tpu.memory_space<vmem>>, %arg3: memref<1x16xf32, #tpu.memory_space<vmem>>, %arg4: memref<1x16xf32, #tpu.memory_space<vmem>>, %arg5: memref<1x8xf32, #tpu.memory_space<vmem>>, %arg6: memref<1x8xf32, #tpu.memory_space<vmem>>, %arg7: memref<16x32xf32, #tpu.memory_space<vmem>>, %arg8: memref<8x32xf32, #tpu.memory_space<vmem>>, %arg9: memref<1x32xf32, #tpu.memory_space<vmem>>, %arg10: memref<32x32xf32, #tpu.memory_space<vmem>>, %arg11: memref<1x32xf32, #tpu.memory_space<vmem>>, %arg12: memref<1x32xf32, #tpu.memory_space<vmem>>, %arg13: memref<128x1xf32, #tpu.memory_space<vmem>>) attributes {dimension_semantics = [#tpu.dimension_semantics<parallel>], iteration_bounds = array<i64: 3>, scalar_prefetch = 0 : i64, scratch_operands = 0 : i64, tpu.core_type = #tpu.core_type<tc>, window_params = [{transform_indices = @transform_0, window_bounds = array<i64: 128, 16>}, {transform_indices = @transform_1, window_bounds = array<i64: 128, 8>}, {pipeline_mode = #tpu.pipeline_mode<synchronous>, transform_indices = @transform_2, window_bounds = array<i64: 1, 16>}, {pipeline_mode = #tpu.pipeline_mode<synchronous>, transform_indices = @transform_3, window_bounds = array<i64: 1, 16>}, {pipeline_mode = #tpu.pipeline_mode<synchronous>, transform_indices = @transform_4, window_bounds = array<i64: 1, 8>}, {pipeline_mode = #tpu.pipeline_mode<synchronous>, transform_indices = @transform_5, window_bounds = array<i64: 1, 8>}, {pipeline_mode = #tpu.pipeline_mode<synchronous>, transform_indices = @transform_6, window_bounds = array<i64: 16, 32>}, {pipeline_mode = #tpu.pipeline_mode<synchronous>, transform_indices = @transform_7, window_bounds = array<i64: 8, 32>}, {pipeline_mode = #tpu.pipeline_mode<synchronous>, transform_indices = @transform_8, window_bounds = array<i64: 1, 32>}, {pipeline_mode = #tpu.pipeline_mode<synchronous>, transform_indices = @transform_9, window_bounds = array<i64: 32, 32>}, {pipeline_mode = #tpu.pipeline_mode<synchronous>, transform_indices = @transform_10, window_bounds = array<i64: 1, 32>}, {pipeline_mode = #tpu.pipeline_mode<synchronous>, transform_indices = @transform_11, window_bounds = array<i64: 1, 32>}, {transform_indices = @transform_12, window_bounds = array<i64: 128, 1>}]} {
    %c0 = arith.constant 0 : index
    %c0_0 = arith.constant 0 : index
    %0 = vector.load %arg1[%c0, %c0_0] : memref<128x16xf32, #tpu.memory_space<vmem>>, vector<128x16xf32>
    %c0_1 = arith.constant 0 : index
    %c0_2 = arith.constant 0 : index
    %1 = vector.load %arg3[%c0_1, %c0_2] : memref<1x16xf32, #tpu.memory_space<vmem>>, vector<1x16xf32>
    %2 = vector.broadcast %1 : vector<1x16xf32> to vector<128x16xf32>
    %3 = arith.mulf %0, %2 : vector<128x16xf32>
    %c0_3 = arith.constant 0 : index
    %c0_4 = arith.constant 0 : index
    %4 = vector.load %arg4[%c0_3, %c0_4] : memref<1x16xf32, #tpu.memory_space<vmem>>, vector<1x16xf32>
    %5 = vector.broadcast %4 : vector<1x16xf32> to vector<128x16xf32>
    %6 = arith.subf %3, %5 : vector<128x16xf32>
    %cst = arith.constant -1.000000e+01 : f32
    %cst_5 = arith.constant 1.000000e+01 : f32
    %7 = vector.broadcast %cst : f32 to vector<128x16xf32>
    %8 = arith.maximumf %7, %6 : vector<128x16xf32>
    %9 = vector.broadcast %cst_5 : f32 to vector<128x16xf32>
    %10 = arith.minimumf %9, %8 : vector<128x16xf32>
    %c0_6 = arith.constant 0 : index
    %c0_7 = arith.constant 0 : index
    %11 = vector.load %arg2[%c0_6, %c0_7] : memref<128x8xf32, #tpu.memory_space<vmem>>, vector<128x8xf32>
    %c0_8 = arith.constant 0 : index
    %c0_9 = arith.constant 0 : index
    %12 = vector.load %arg5[%c0_8, %c0_9] : memref<1x8xf32, #tpu.memory_space<vmem>>, vector<1x8xf32>
    %13 = vector.broadcast %12 : vector<1x8xf32> to vector<128x8xf32>
    %14 = arith.mulf %11, %13 : vector<128x8xf32>
    %c0_10 = arith.constant 0 : index
    %c0_11 = arith.constant 0 : index
    %15 = vector.load %arg6[%c0_10, %c0_11] : memref<1x8xf32, #tpu.memory_space<vmem>>, vector<1x8xf32>
    %16 = vector.broadcast %15 : vector<1x8xf32> to vector<128x8xf32>
    %17 = arith.subf %14, %16 : vector<128x8xf32>
    %cst_12 = arith.constant -1.000000e+01 : f32
    %cst_13 = arith.constant 1.000000e+01 : f32
    %18 = vector.broadcast %cst_12 : f32 to vector<128x8xf32>
    %19 = arith.maximumf %18, %17 : vector<128x8xf32>
    %20 = vector.broadcast %cst_13 : f32 to vector<128x8xf32>
    %21 = arith.minimumf %20, %19 : vector<128x8xf32>
    %c0_14 = arith.constant 0 : index
    %c0_15 = arith.constant 0 : index
    %22 = vector.load %arg7[%c0_14, %c0_15] : memref<16x32xf32, #tpu.memory_space<vmem>>, vector<16x32xf32>
    %cst_16 = arith.constant dense<0.000000e+00> : vector<128x32xf32>
    %23 = tpu.matmul %10, %22, %cst_16 {dimension_numbers = #tpu.dot_dimension_numbers<[1], [0], [0], [1], [0, 0, 1, 1], [], []>} : vector<128x16xf32>, vector<16x32xf32>, vector<128x32xf32> -> vector<128x32xf32>
    %c0_17 = arith.constant 0 : index
    %c0_18 = arith.constant 0 : index
    %24 = vector.load %arg8[%c0_17, %c0_18] : memref<8x32xf32, #tpu.memory_space<vmem>>, vector<8x32xf32>
    %cst_19 = arith.constant dense<0.000000e+00> : vector<128x32xf32>
    %25 = tpu.matmul %21, %24, %cst_19 {dimension_numbers = #tpu.dot_dimension_numbers<[1], [0], [0], [1], [0, 0, 1, 1], [], []>} : vector<128x8xf32>, vector<8x32xf32>, vector<128x32xf32> -> vector<128x32xf32>
    %26 = arith.addf %23, %25 : vector<128x32xf32>
    %c0_20 = arith.constant 0 : index
    %c0_21 = arith.constant 0 : index
    %27 = vector.load %arg9[%c0_20, %c0_21] : memref<1x32xf32, #tpu.memory_space<vmem>>, vector<1x32xf32>
    %28 = vector.broadcast %27 : vector<1x32xf32> to vector<128x32xf32>
    %29 = arith.addf %26, %28 : vector<128x32xf32>
    %30 = math.tanh %29 : vector<128x32xf32>
    %c0_22 = arith.constant 0 : index
    %c0_23 = arith.constant 0 : index
    %31 = vector.load %arg10[%c0_22, %c0_23] : memref<32x32xf32, #tpu.memory_space<vmem>>, vector<32x32xf32>
    %cst_24 = arith.constant dense<0.000000e+00> : vector<128x32xf32>
    %32 = tpu.matmul %30, %31, %cst_24 {dimension_numbers = #tpu.dot_dimension_numbers<[1], [0], [0], [1], [0, 0, 1, 1], [], []>} : vector<128x32xf32>, vector<32x32xf32>, vector<128x32xf32> -> vector<128x32xf32>
    %c0_25 = arith.constant 0 : index
    %c0_26 = arith.constant 0 : index
    %33 = vector.load %arg11[%c0_25, %c0_26] : memref<1x32xf32, #tpu.memory_space<vmem>>, vector<1x32xf32>
    %34 = vector.broadcast %33 : vector<1x32xf32> to vector<128x32xf32>
    %35 = arith.addf %32, %34 : vector<128x32xf32>
    %36 = math.tanh %35 : vector<128x32xf32>
    %c0_27 = arith.constant 0 : index
    %c0_28 = arith.constant 0 : index
    %37 = vector.load %arg12[%c0_27, %c0_28] : memref<1x32xf32, #tpu.memory_space<vmem>>, vector<1x32xf32>
    %38 = vector.broadcast %37 : vector<1x32xf32> to vector<128x32xf32>
    %39 = arith.mulf %36, %38 : vector<128x32xf32>
    %cst_29 = arith.constant dense<0.000000e+00> : vector<128xf32>
    %40 = vector.multi_reduction <add>, %39, %cst_29 [1] : vector<128x32xf32> to vector<128xf32>
    %41 = vector.shape_cast %40 : vector<128xf32> to vector<128x1xf32>
    %c0_30 = arith.constant 0 : index
    %c0_31 = arith.constant 0 : index
    %42 = vector.load %arg13[%c0_30, %c0_31] : memref<128x1xf32, #tpu.memory_space<vmem>>, vector<128x1xf32>
    tpu.vector_store %arg13[%c0_30, %c0_31], %41 {strides = array<i32>} : memref<128x1xf32, #tpu.memory_space<vmem>>, vector<128x1xf32>,
    return
  }
  func.func @transform_0(%arg0: i32) -> (i32, i32) {
    %c0_i32 = arith.constant 0 : i32
    %c0_i32_0 = arith.constant 0 : i32
    return %arg0, %c0_i32 : i32, i32
  }
  func.func @transform_1(%arg0: i32) -> (i32, i32) {
    %c0_i32 = arith.constant 0 : i32
    %c0_i32_0 = arith.constant 0 : i32
    return %arg0, %c0_i32 : i32, i32
  }
  func.func @transform_2(%arg0: i32) -> (i32, i32) {
    %c0_i32 = arith.constant 0 : i32
    %c0_i32_0 = arith.constant 0 : i32
    %c0_i32_1 = arith.constant 0 : i32
    return %c0_i32, %c0_i32_0 : i32, i32
  }
  func.func @transform_3(%arg0: i32) -> (i32, i32) {
    %c0_i32 = arith.constant 0 : i32
    %c0_i32_0 = arith.constant 0 : i32
    %c0_i32_1 = arith.constant 0 : i32
    return %c0_i32, %c0_i32_0 : i32, i32
  }
  func.func @transform_4(%arg0: i32) -> (i32, i32) {
    %c0_i32 = arith.constant 0 : i32
    %c0_i32_0 = arith.constant 0 : i32
    %c0_i32_1 = arith.constant 0 : i32
    return %c0_i32, %c0_i32_0 : i32, i32
  }
  func.func @transform_5(%arg0: i32) -> (i32, i32) {
    %c0_i32 = arith.constant 0 : i32
    %c0_i32_0 = arith.constant 0 : i32
    %c0_i32_1 = arith.constant 0 : i32
    return %c0_i32, %c0_i32_0 : i32, i32
  }
  func.func @transform_6(%arg0: i32) -> (i32, i32) {
    %c0_i32 = arith.constant 0 : i32
    %c0_i32_0 = arith.constant 0 : i32
    %c0_i32_1 = arith.constant 0 : i32
    return %c0_i32, %c0_i32_0 : i32, i32
  }
  func.func @transform_7(%arg0: i32) -> (i32, i32) {
    %c0_i32 = arith.constant 0 : i32
    %c0_i32_0 = arith.constant 0 : i32
    %c0_i32_1 = arith.constant 0 : i32
    return %c0_i32, %c0_i32_0 : i32, i32
  }
  func.func @transform_8(%arg0: i32) -> (i32, i32) {
    %c0_i32 = arith.constant 0 : i32
    %c0_i32_0 = arith.constant 0 : i32
    %c0_i32_1 = arith.constant 0 : i32
    return %c0_i32, %c0_i32_0 : i32, i32
  }
  func.func @transform_9(%arg0: i32) -> (i32, i32) {
    %c0_i32 = arith.constant 0 : i32
    %c0_i32_0 = arith.constant 0 : i32
    %c0_i32_1 = arith.constant 0 : i32
    return %c0_i32, %c0_i32_0 : i32, i32
  }
  func.func @transform_10(%arg0: i32) -> (i32, i32) {
    %c0_i32 = arith.constant 0 : i32
    %c0_i32_0 = arith.constant 0 : i32
    %c0_i32_1 = arith.constant 0 : i32
    return %c0_i32, %c0_i32_0 : i32, i32
  }
  func.func @transform_11(%arg0: i32) -> (i32, i32) {
    %c0_i32 = arith.constant 0 : i32
    %c0_i32_0 = arith.constant 0 : i32
    %c0_i32_1 = arith.constant 0 : i32
    return %c0_i32, %c0_i32_0 : i32, i32
  }
  func.func @transform_12(%arg0: i32) -> (i32, i32) {
    %c0_i32 = arith.constant 0 : i32
    %c0_i32_0 = arith.constant 0 : i32
    return %arg0, %c0_i32 : i32, i32
  }
}

</mosaic_0001>

<bundles_post_ra>
// kernel: tpu_custom_call.1
= control target key start
LH: loop header
LB: loop body
LE: loop exit
PB: predicated region body
PF: predicated region fallthrough
CT: control target
= control target key end

     0   :  { %s1850_s21 = smov 0   ;;  %s2181_s0 = inlined_call_operand.vmem [shape: f32[384,16], index: 0, kind: input, shape index: {}]   ;;  %s2182_s1 = inlined_call_operand.vmem [shape: f32[384,8], index: 1, kind: input, shape index: {}]   ;;  %s2183_s2 = inlined_call_operand.vmem [shape: f32[1,16], index: 2, kind: input, shape index: {}]   ;;  %s2184_s3 = inlined_call_operand.vmem [shape: f32[1,16], index: 3, kind: input, shape index: {}]   ;;  %s2185_s4 = inlined_call_operand.vmem [shape: f32[1,8], index: 4, kind: input, shape index: {}]   ;;  %s2186_s5 = inlined_call_operand.vmem [shape: f32[1,8], index: 5, kind: input, shape index: {}]   ;;  %s2187_s6 = inlined_call_operand.vmem [shape: f32[16,32], index: 6, kind: input, shape index: {}]   ;;  %s2188_s7 = inlined_call_operand.vmem [shape: f32[8,32], index: 7, kind: input, shape index: {}]   ;;  %s2189_s8 = inlined_call_operand.vmem [shape: f32[1,32], index: 8, kind: input, shape index: {}]   ;;  %s2190_s9 = inlined_call_operand.vmem [shape: f32[32,32], index: 9, kind: input, shape index: {}]   ;;  %s2191_s10 = inlined_call_operand.vmem [shape: f32[1,32], index: 10, kind: input, shape index: {}]   ;;  %s2192_s11 = inlined_call_operand.vmem [shape: f32[1,32], index: 11, kind: input, shape index: {}]   ;;  %s2193_s12 = inlined_call_operand.vmem [shape: f32[384,1], index: 12, kind: output, shape index: {}]  }
   0x1 LB: > { %s1434_s22 = sadd.s32 4294967295, %s1783_s21   ;;  %p1438_p0 = scmp.ge.s32.totalorder %s1783_s21, 1  ;;  %s1783_s21 = sphi %s1850_s21, %s22_s21  }
   0x2   : > { %p374_p1 = scmp.lt.s32.totalorder %s1783_s21, 4 }
   0x4   : > { %p375_p2 = pnand %p1438_p0, %p374_p1 }
   0x5   : > { %v629_v0 = vld [vmem:[%s2188_s7] sm:$0xff] (!%p375_p2)  ;;  %s1439_s25 = sshll.u32 (!%p375_p2), %s1434_s22, 4  ;;  %v628_v2 = vld [vmem:[%s2187_s6 + $0x8] sm:$0xff] (!%p375_p2)  ;;  %vm630_vm0 = vcmask (!%p375_p2), 64512   ;;  %vm824_vm1 = vcmask (!%p375_p2), 130048   ;;  %vm1068_vm2 = vcmask (!%p375_p2), 261120  }
   0x6   : > { %378 = sbr.rel (%p375_p2) target bundleno = 670 (0x29e), region = 68  ;;  %1589 = vmatprep.subr.mxu0 (!%p375_p2), %v629_v0  ;;  %p422_p3 = scmp.lt.s32.totalorder (!%p375_p2), %s1439_s25, 47  ;;  %v627_v1 = vld [vmem:[%s2187_s6] sm:$0xff] (!%p375_p2)  ;;  %1687 = vmatprep.subr.mxu1 (!%p375_p2), %v629_v0  ;;  %v1058_v5 = vld [vmem:[%s2190_s9 + $0x8] sm:$0xff] (!%p375_p2)  ;;  %vm1349_vm3 = vcmask (!%p375_p2), 7168  }
   0x7   : > { %1590 = vmatpush3.msra.mxu0 (!%p375_p2), %v629_v0  ;;  %v1675_v3 = vpack.c.bf16 (!%p375_p2), %v628_v2, %v627_v1  ;;  %1688 = vmatpush3.msra.mxu1 (!%p375_p2), %v629_v0  ;;  %v1057_v4 = vld [vmem:[%s2190_s9] sm:$0xff] (!%p375_p2) }
   0x8   : > { %v1873_v6 = vpack.c.bf16 (!%p375_p2), %v1058_v5, %v1057_v4  ;;  %v1880_v7 = vld [vmem:[%s2185_s4] ss:$0 sm:$0xff] (!%p375_p2) }
   0x9   : > { %1676 = vmatprep.subr.bf16.mxu0 (!%p375_p2), %v1675_v3  ;;  %v1892_v8 = vld [vmem:[%s2186_s5] ss:$0 sm:$0xff] (!%p375_p2) }
   0xa   : > { %1680 = vmatprep.subr.bf16.mxu1 (!%p375_p2), %v1873_v6  ;;  %v1924_v33 = vld [vmem:[%s2183_s2] ss:$0 sm:$0xff] (!%p375_p2) }
   0xb   : > { %v1936_v40 = vld [vmem:[%s2184_s3] ss:$0 sm:$0xff] (!%p375_p2) }
   0xd   : > { %s2195_s25 = smov (!%p422_p3, %s1439_s25), 47 }
   0xe   : > { %s1875_s16 = sshll.u32 %s2195_s25, 3 }
   0xf   : > { %s1887_s22 = scalar_lea.vmem %s2182_s1, %s1875_s16  ;;  %s1910_s27 = scalar_lea.vmem %s2181_s0, %s1875_s16 }
  0x10   : > { %v533_v9 = vld [vmem:[%s1887_s22] sm:$0xff]  ;;  %v534_v10 = vld [vmem:[%s1887_s22 + $0x8] sm:$0xff]  ;;  %v535_v11 = vld [vmem:[%s1887_s22 + $0x10] sm:$0xff]  ;;  %s2144_s28 = scalar_lea.vmem %s2193_s12, %s1875_s16 }
  0x11   : > { %v556_v12 = vmul.f32 %v1880_v7, %v533_v9  ;;  %v557_v13 = vmul.f32 %v1880_v7, %v534_v10  ;;  %v558_v14 = vmul.f32 %v1880_v7, %v535_v11  ;;  %v536_v15 = vld [vmem:[%s1887_s22 + $0x18] sm:$0xff]  ;;  %v537_v16 = vld [vmem:[%s1887_s22 + $0x20] sm:$0xff]  ;;  %v538_v17 = vld [vmem:[%s1887_s22 + $0x28] sm:$0xff] }
  0x12   : > { %v559_v18 = vmul.f32 %v1880_v7, %v536_v15  ;;  %v560_v19 = vmul.f32 %v1880_v7, %v537_v16  ;;  %v539_v20 = vld [vmem:[%s1887_s22 + $0x30] sm:$0xff]  ;;  %v561_v25 = vmul.f32 %v1880_v7, %v538_v17  ;;  %v540_v27 = vld [vmem:[%s1887_s22 + $0x38] sm:$0xff]  ;;  %v439_v32 = vld [vmem:[%s1910_s27] sm:$0xff] }
  0x13   : > { %v579_v21 = vsub.f32 %v556_v12, %v1892_v8  ;;  %v580_v22 = vsub.f32 %v557_v13, %v1892_v8  ;;  %v581_v23 = vsub.f32 %v558_v14, %v1892_v8  ;;  %v562_v26 = vmul.f32 %v1880_v7, %v539_v20  ;;  %v440_v41 = vld [vmem:[%s1910_s27 + $0x8] sm:$0xff]  ;;  %v441_v42 = vld [vmem:[%s1910_s27 + $0x10] sm:$0xff]  ;;  %v541_v43 = vld [vmem:[%s1887_s22 + $0x40] sm:$0xff] }
  0x14   : > { %v582_v24 = vsub.f32 %v559_v18, %v1892_v8  ;;  %v583_v31 = vsub.f32 %v560_v19, %v1892_v8  ;;  %v563_v34 = vmul.f32 %v1880_v7, %v540_v27  ;;  %v584_v36 = vsub.f32 %v561_v25, %v1892_v8  ;;  %v542_v44 = vld [vmem:[%s1887_s22 + $0x48] sm:$0xff]  ;;  %v543_v46 = vld [vmem:[%s1887_s22 + $0x50] sm:$0xff]  ;;  %v442_v50 = vld [vmem:[%s1910_s27 + $0x18] sm:$0xff] }
  0x15   : > { %v1465_v28 = vclamps-f32 %v579_v21, 10.0  ;;  %v1466_v29 = vclamps-f32 %v580_v22, 10.0  ;;  %v1467_v30 = vclamps-f32 %v581_v23, 10.0  ;;  %v585_v37 = vsub.f32 %v562_v26, %v1892_v8  ;;  %v443_v53 = vld [vmem:[%s1910_s27 + $0x20] sm:$0xff]  ;;  %v544_v56 = vld [vmem:[%s1887_s22 + $0x58] sm:$0xff]  ;;  %v444_v0 = vld [vmem:[%s1910_s27 + $0x28] sm:$0xff] }
  0x16   : > { %v1468_v35 = vclamps-f32 %v582_v24, 10.0  ;;  %v1469_v38 = vclamps-f32 %v583_v31, 10.0  ;;  %v462_v39 = vmul.f32 %v1924_v33, %v439_v32  ;;  %v586_v45 = vsub.f32 %v563_v34, %v1892_v8  ;;  %v546_v4 = vld [vmem:[%s1887_s22 + $0x68] sm:$0xff]  ;;  %v547_v12 = vld [vmem:[%s1887_s22 + $0x70] sm:$0xff]  ;;  %v548_v20 = vld [vmem:[%s1887_s22 + $0x78] sm:$0xff] }
  0x17   : > { %1591 = vmatprep.mubr.msk.f32.mxu0 %vm630_vm0, %v1465_v28  ;;  %v1470_v47 = vclamps-f32 %v584_v36, 10.0  ;;  %v1471_v48 = vclamps-f32 %v585_v37, 10.0  ;;  %v463_v49 = vmul.f32 %v1924_v33, %v440_v41  ;;  %v464_v52 = vmul.f32 %v1924_v33, %v441_v42  ;;  %v445_v13 = vld [vmem:[%s1910_s27 + $0x30] sm:$0xff]  ;;  %v446_v27 = vld [vmem:[%s1910_s27 + $0x38] sm:$0xff]  ;;  %v448_v42 = vld [vmem:[%s1910_s27 + $0x48] sm:$0xff] }
  0x18   : > { %1592 = vmatmul.mubr.msk.f32.vlgmr.msra.gmra.mrb[0].mxu0 %vm630_vm0, %v1466_v29  ;;  %v485_v51 = vsub.f32 %v462_v39, %v1936_v40  ;;  %v564_v54 = vmul.f32 %v1880_v7, %v541_v43  ;;  %v565_v55 = vmul.f32 %v1880_v7, %v542_v44  ;;  %v566_v57 = vmul.f32 %v1880_v7, %v543_v46  ;;  %v449_v44 = vld [vmem:[%s1910_s27 + $0x50] sm:$0xff] }
  0x19   : > { %1678 = vmatpush3.bf16.msra.mxu0 %v1675_v3  ;;  %1594 = vmatprep.mubr.msk.f32.mxu0 %vm630_vm0, %v1467_v30  ;;  %v1472_v58 = vclamps-f32 %v586_v45, 10.0  ;;  %v465_v59 = vmul.f32 %v1924_v33, %v442_v50  ;;  %v486_v62 = vsub.f32 %v463_v49, %v1936_v40  ;;  %v466_v63 = vmul.f32 %v1924_v33, %v443_v53  ;;  %v545_v3 = vld [vmem:[%s1887_s22 + $0x60] sm:$0xff] }
  0x1a   : > { %v587_v60 = vsub.f32 %v564_v54, %v1892_v8  ;;  %v588_v61 = vsub.f32 %v565_v55, %v1892_v8  ;;  %v589_v1 = vsub.f32 %v566_v57, %v1892_v8  ;;  %v567_v2 = vmul.f32 %v1880_v7, %v544_v56  ;;  %v447_v30 = vld [vmem:[%s1910_s27 + $0x40] sm:$0xff] }
  0x1b   : > { %v1447_v5 = vclamps-f32 %v485_v51, 10.0  ;;  %v487_v9 = vsub.f32 %v464_v52, %v1936_v40  ;;  %v488_v16 = vsub.f32 %v465_v59, %v1936_v40  ;;  %v467_v17 = vmul.f32 %v1924_v33, %v444_v0  ;;  %v450_v51 = vld [vmem:[%s1910_s27 + $0x58] sm:$0xff]  ;;  %v451_v52 = vld [vmem:[%s1910_s27 + $0x60] sm:$0xff]  ;;  %v452_v59 = vld [vmem:[%s1910_s27 + $0x68] sm:$0xff] }
  0x1c   : > { %1595 = vmatmul.mubr.msk.f32.gmra.mrb[2].mxu0 %vm630_vm0, %v1468_v35  ;;  %v1473_v10 = vclamps-f32 %v587_v60, 10.0  ;;  %v1474_v11 = vclamps-f32 %v588_v61, 10.0  ;;  %v1475_v14 = vclamps-f32 %v589_v1, 10.0  ;;  %v590_v15 = vsub.f32 %v567_v2, %v1892_v8  ;;  %v453_v60 = vld [vmem:[%s1910_s27 + $0x70] sm:$0xff] }
  0x1d   : > { %1597 = vmatprep.mubr.msk.f32.mxu0 %vm630_vm0, %v1469_v38  ;;  %v568_v18 = vmul.f32 %v1880_v7, %v545_v3  ;;  %v569_v19 = vmul.f32 %v1880_v7, %v546_v4  ;;  %v1448_v21 = vclamps-f32 %v486_v62, 10.0  ;;  %v489_v22 = vsub.f32 %v466_v63, %v1936_v40  ;;  %v454_v3 = vld [vmem:[%s1910_s27 + $0x78] sm:$0xff] }
  0x1e   : > { %1603 = vmatprep.mubr.msk.f32.mxu1 %vm630_vm0, %v1473_v10  ;;  %v1476_v23 = vclamps-f32 %v590_v15, 10.0  ;;  %v570_v24 = vmul.f32 %v1880_v7, %v547_v12  ;;  %v1449_v25 = vclamps-f32 %v487_v9, 10.0  ;;  %v468_v26 = vmul.f32 %v1924_v33, %v445_v13 }
  0x1f   : > { %1604 = vmatmul.mubr.msk.f32.vlgmr.msra.gmra.mrb[0].mxu1 %vm630_vm0, %v1474_v11  ;;  %v591_v28 = vsub.f32 %v568_v18, %v1892_v8  ;;  %v592_v29 = vsub.f32 %v569_v19, %v1892_v8  ;;  %v571_v32 = vmul.f32 %v1880_v7, %v548_v20  ;;  %v490_v34 = vsub.f32 %v467_v17, %v1936_v40  ;;  %v2048_v19 = vld [vmem:[%s2189_s8] ss:$0 sm:$0xff] }
  0x20   : > { %1598 = vmatmul.mubr.msk.f32.gmra.mrb[4].mxu0 %vm630_vm0, %v1470_v47  ;;  %1606 = vmatprep.mubr.msk.f32.mxu1 %vm630_vm0, %v1475_v14  ;;  %v593_v31 = vsub.f32 %v570_v24, %v1892_v8  ;;  %v1450_v36 = vclamps-f32 %v488_v16, 10.0  ;;  %v469_v37 = vmul.f32 %v1924_v33, %v446_v27  ;;  %v1451_v41 = vclamps-f32 %v489_v22, 10.0  ;;  %v1060_v16 = vld [vmem:[%s2190_s9 + $0x18] sm:$0xff] }
  0x21   : > { %1600 = vmatprep.mubr.msk.f32.mxu0 %vm630_vm0, %v1471_v48  ;;  %1682 = vmatpush3.bf16.msra.mxu1 %v1873_v6  ;;  %v1477_v35 = vclamps-f32 %v591_v28, 10.0  ;;  %v1478_v38 = vclamps-f32 %v592_v29, 10.0  ;;  %v594_v39 = vsub.f32 %v571_v32, %v1892_v8  ;;  %v491_v7 = vsub.f32 %v468_v26, %v1936_v40 }
  0x22   : > { %v470_v6 = vmul.f32 %v1924_v33, %v447_v30  ;;  %v1479_v43 = vclamps-f32 %v593_v31, 10.0  ;;  %v1452_v45 = vclamps-f32 %v490_v34, 10.0  ;;  %v492_v46 = vsub.f32 %v469_v37, %v1936_v40 }
  0x23   : > { %1607 = vmatmul.mubr.msk.f32.gmra.mrb[2].mxu1 %vm630_vm0, %v1476_v23  ;;  %v471_v8 = vmul.f32 %v1924_v33, %v448_v42  ;;  %v1480_v47 = vclamps-f32 %v594_v39, 10.0  ;;  %v1453_v48 = vclamps-f32 %v491_v7, 10.0  ;;  %v472_v50 = vmul.f32 %v1924_v33, %v449_v44 }
  0x24   : > { %1601 = vmatmul.mubr.msk.f32.gmra.mrb[6].mxu0 %vm630_vm0, %v1472_v58  ;;  %1609 = vmatprep.mubr.msk.f32.mxu1 %vm630_vm0, %v1477_v35  ;;  %v493_v49 = vsub.f32 %v470_v6, %v1936_v40  ;;  %v1454_v53 = vclamps-f32 %v492_v46, 10.0  ;;  %v473_v55 = vmul.f32 %v1924_v33, %v450_v51  ;;  %v474_v58 = vmul.f32 %v1924_v33, %v451_v52 }
  0x25   : > { %1619 = vmatprep.mubr.msk.f32.mxu0 %vm824_vm1, %v1447_v5  ;;  %v494_v54 = vsub.f32 %v471_v8, %v1936_v40  ;;  %v495_v57 = vsub.f32 %v472_v50, %v1936_v40  ;;  %v475_v63 = vmul.f32 %v1924_v33, %v452_v59  ;;  %v476_v2 = vmul.f32 %v1924_v33, %v453_v60 }
  0x26   : > { %v1455_v56 = vclamps-f32 %v493_v49, 10.0  ;;  %v496_v62 = vsub.f32 %v473_v55, %v1936_v40  ;;  %v497_v1 = vsub.f32 %v474_v58, %v1936_v40  ;;  %v477_v9 = vmul.f32 %v1924_v33, %v454_v3  ;;  %v1059_v33 = vld [vmem:[%s2190_s9 + $0x10] sm:$0xff] }
  0x27   : > { %1610 = vmatmul.mubr.msk.f32.gmra.mrb[4].mxu1 %vm630_vm0, %v1478_v38  ;;  %v1456_v61 = vclamps-f32 %v494_v54, 10.0  ;;  %v1457_v0 = vclamps-f32 %v495_v57, 10.0  ;;  %v498_v5 = vsub.f32 %v475_v63, %v1936_v40  ;;  %v499_v11 = vsub.f32 %v476_v2, %v1936_v40 }
  0x28   : > { %1620 = vmatmul.mubr.msk.f32.vlgmr.msra.gmra.mrb[0].mxu0 %vm824_vm1, %v1448_v21  ;;  %1612 = vmatprep.mubr.msk.f32.mxu1 %vm630_vm0, %v1479_v43  ;;  %v1458_v4 = vclamps-f32 %v496_v62, 10.0  ;;  %v1459_v10 = vclamps-f32 %v497_v1, 10.0  ;;  %v500_v13 = vsub.f32 %v477_v9, %v1936_v40  ;;  %v1683_v17 = vpack.c.bf16 %v1060_v16, %v1059_v33 }
  0x29   : > { %1622 = vmatprep.mubr.msk.f32.mxu0 %vm824_vm1, %v1449_v25  ;;  %v1460_v12 = vclamps-f32 %v498_v5, 10.0  ;;  %v1461_v14 = vclamps-f32 %v499_v11, 10.0 }
  0x2a   : > { %v1462_v15 = vclamps-f32 %v500_v13, 10.0  ;;  %1684 = vmatprep.subr.bf16.mxu1 %v1683_v17 }
  0x2b   : > { %1613 = vmatmul.mubr.msk.f32.gmra.mrb[6].mxu1 %vm630_vm0, %v1480_v47 }
  0x2c   : > { %1623 = vmatmul.mubr.msk.f32.gmra.mrb[2].mxu0 %vm824_vm1, %v1450_v36  ;;  %1686 = vmatpush3.bf16.msra.mxu1 %v1683_v17 }
  0x2d   : > { %1625 = vmatprep.mubr.msk.f32.mxu0 %vm824_vm1, %v1451_v41 }
  0x30   : > { %1626 = vmatmul.mubr.msk.f32.gmra.mrb[4].mxu0 %vm824_vm1, %v1452_v45 }
  0x31   : > { %1628 = vmatprep.mubr.msk.f32.mxu0 %vm824_vm1, %v1453_v48 }
  0x34   : > { %1629 = vmatmul.mubr.msk.f32.gmra.mrb[6].mxu0 %vm824_vm1, %v1454_v53 }
  0x35   : > { %1631 = vmatprep.mubr.msk.f32.mxu0 %vm824_vm1, %v1455_v56 }
  0x38   : > { %1632 = vmatmul.mubr.msk.f32.gmra.mrb[8].mxu0 %vm824_vm1, %v1456_v61 }
  0x39   : > { %1634 = vmatprep.mubr.msk.f32.mxu0 %vm824_vm1, %v1457_v0 }
  0x3c   : > { %1635 = vmatmul.mubr.msk.f32.gmra.mrb[10].mxu0 %vm824_vm1, %v1458_v4 }
  0x3d   : > { %1637 = vmatprep.mubr.msk.f32.mxu0 %vm824_vm1, %v1459_v10 }
  0x40   : > { %1638 = vmatmul.mubr.msk.f32.gmra.mrb[12].mxu0 %vm824_vm1, %v1460_v12 }
  0x41   : > { %1640 = vmatprep.mubr.msk.f32.mxu0 %vm824_vm1, %v1461_v14 }
  0x44   : > { %1641 = vmatmul.mubr.msk.f32.gmra.mrb[14].mxu0 %vm824_vm1, %v1462_v15 }
  0xf2   : > { %v1605_v40 = vpop.f32.mrb[0].mxu1 }
  0xf3   : > { %v785_v18 = vpop.f32.mrb[1].mxu1 }
  0xf6   : > { %v1608_v21 = vpop.f32.mrb[2].mxu1 }
  0xf7   : > { %v795_v24 = vpop.f32.mrb[3].mxu1 }
  0xfa   : > { %v1611_v27 = vpop.f32.mrb[4].mxu1 }
  0xfb   : > { %v1621_v20 = vpop.f32.mrb[0].mxu0  ;;  %v805_v30 = vpop.f32.mrb[5].mxu1 }
  0xfc   : > { %v1026_v22 = vadd.f32 %v1621_v20, %v2048_v19  ;;  %v939_v23 = vpop.f32.mrb[1].mxu0 }
  0xfd   : > { %v1025_v25 = vadd.f32 %v2048_v19, %v939_v23 }
  0xfe   : > { %v1614_v34 = vpop.f32.mrb[6].mxu1 }
  0xff   : > { %1713 = vtanh.f32 %v1025_v25  ;;  %v1624_v26 = vpop.f32.mrb[2].mxu0  ;;  %v815_v37 = vpop.f32.mrb[7].mxu1 }
 0x100   : > { %1715 = vtanh.f32 %v1026_v22  ;;  %v1028_v28 = vadd.f32 %v1624_v26, %v2048_v19  ;;  %v949_v29 = vpop.f32.mrb[3].mxu0 }
 0x101   : > { %v1027_v31 = vadd.f32 %v2048_v19, %v949_v29 }
 0x103   : > { %1717 = vtanh.f32 %v1027_v31  ;;  %v1627_v32 = vpop.f32.mrb[4].mxu0  ;;  %v2096_v31 = vld [vmem:[%s2192_s11] ss:$0 sm:$0xff] }
 0x104   : > { %1719 = vtanh.f32 %v1028_v28  ;;  %v1030_v35 = vadd.f32 %v1627_v32, %v2048_v19  ;;  %v959_v36 = vpop.f32.mrb[5].mxu0 }
 0x105   : > { %v1029_v38 = vadd.f32 %v2048_v19, %v959_v36 }
 0x107   : > { %1721 = vtanh.f32 %v1029_v38  ;;  %v1630_v39 = vpop.f32.mrb[6].mxu0 }
 0x108   : > { %1723 = vtanh.f32 %v1030_v35  ;;  %v1032_v41 = vadd.f32 %v1630_v39, %v2048_v19  ;;  %v969_v7 = vpop.f32.mrb[7].mxu0 }
 0x109   : > { %v1714_v6 = vpop.eup %1713  ;;  %v1031_v42 = vadd.f32 %v2048_v19, %v969_v7 }
 0x10a   : > { %v1716_v43 = vpop.eup %1715  ;;  %1651 = vmatprep.mubr.msk.f32.mxu1 %vm1068_vm2, %v1714_v6 }
 0x10b   : > { %1725 = vtanh.f32 %v1031_v42  ;;  %v1633_v44 = vpop.f32.mrb[8].mxu0  ;;  %1652 = vmatmul.mubr.msk.f32.vlgmr.msra.gmra.mrb[8].mxu1 %vm1068_vm2, %v1716_v43 }
 0x10c   : > { %1727 = vtanh.f32 %v1032_v41  ;;  %v985_v45 = vadd.f32 %v1633_v44, %v1605_v40  ;;  %v979_v46 = vpop.f32.mrb[9].mxu0 }
 0x10d   : > { %v1718_v8 = vpop.eup %1717  ;;  %v980_v47 = vadd.f32 %v979_v46, %v785_v18  ;;  %v2085_v18 = vld [vmem:[%s2191_s10] ss:$0 sm:$0xff] }
 0x10e   : > { %v1720_v48 = vpop.eup %1719  ;;  %v1034_v49 = vadd.f32 %v2048_v19, %v985_v45  ;;  %1654 = vmatprep.mubr.msk.f32.mxu1 %vm1068_vm2, %v1718_v8 }
 0x10f   : > { %v1033_v50 = vadd.f32 %v2048_v19, %v980_v47  ;;  %v1636_v51 = vpop.f32.mrb[10].mxu0  ;;  %1655 = vmatmul.mubr.msk.f32.gmra.mrb[10].mxu1 %vm1068_vm2, %v1720_v48 }
 0x110   : > { %1729 = vtanh.f32 %v1034_v49  ;;  %v995_v52 = vadd.f32 %v1636_v51, %v1608_v21  ;;  %v989_v53 = vpop.f32.mrb[11].mxu0 }
 0x111   : > { %v1722_v54 = vpop.eup %1721  ;;  %1731 = vtanh.f32 %v1033_v50  ;;  %v990_v55 = vadd.f32 %v989_v53, %v795_v24 }
 0x112   : > { %v1724_v56 = vpop.eup %1723  ;;  %v1036_v57 = vadd.f32 %v2048_v19, %v995_v52  ;;  %1657 = vmatprep.mubr.msk.f32.mxu1 %vm1068_vm2, %v1722_v54 }
 0x113   : > { %v1035_v58 = vadd.f32 %v2048_v19, %v990_v55  ;;  %v1639_v59 = vpop.f32.mrb[12].mxu0  ;;  %1658 = vmatmul.mubr.msk.f32.gmra.mrb[12].mxu1 %vm1068_vm2, %v1724_v56 }
 0x114   : > { %1733 = vtanh.f32 %v1036_v57  ;;  %v1005_v60 = vadd.f32 %v1639_v59, %v1611_v27  ;;  %v999_v61 = vpop.f32.mrb[13].mxu0 }
 0x115   : > { %v1726_v62 = vpop.eup %1725  ;;  %1735 = vtanh.f32 %v1035_v58  ;;  %v1000_v63 = vadd.f32 %v999_v61, %v805_v30 }
 0x116   : > { %v1728_v0 = vpop.eup %1727  ;;  %v1038_v1 = vadd.f32 %v2048_v19, %v1005_v60  ;;  %1660 = vmatprep.mubr.msk.f32.mxu1 %vm1068_vm2, %v1726_v62 }
 0x117   : > { %v1037_v2 = vadd.f32 %v2048_v19, %v1000_v63  ;;  %v1642_v3 = vpop.f32.mrb[14].mxu0  ;;  %1661 = vmatmul.mubr.msk.f32.gmra.mrb[14].mxu1 %vm1068_vm2, %v1728_v0 }
 0x118   : > { %1737 = vtanh.f32 %v1038_v1  ;;  %v1015_v4 = vadd.f32 %v1642_v3, %v1614_v34  ;;  %v1009_v5 = vpop.f32.mrb[15].mxu0 }
 0x119   : > { %1739 = vtanh.f32 %v1037_v2  ;;  %v1010_v9 = vadd.f32 %v1009_v5, %v815_v37 }
 0x11a   : > { %v1730_v10 = vpop.eup %1729  ;;  %v1040_v11 = vadd.f32 %v2048_v19, %v1015_v4 }
 0x11b   : > { %v1732_v12 = vpop.eup %1731  ;;  %v1039_v13 = vadd.f32 %v2048_v19, %v1010_v9 }
 0x11c   : > { %1741 = vtanh.f32 %v1040_v11  ;;  %1663 = vmatprep.mubr.msk.f32.mxu1 %vm1068_vm2, %v1732_v12 }
 0x11d   : > { %1743 = vtanh.f32 %v1039_v13  ;;  %1664 = vmatmul.mubr.msk.f32.gmra.mrb[16].mxu1 %vm1068_vm2, %v1730_v10 }
 0x11e   : > { %v1734_v14 = vpop.eup %1733 }
 0x11f   : > { %v1736_v15 = vpop.eup %1735 }
 0x120   : > { %1666 = vmatprep.mubr.msk.f32.mxu1 %vm1068_vm2, %v1736_v15 }
 0x121   : > { %1667 = vmatmul.mubr.msk.f32.gmra.mrb[18].mxu1 %vm1068_vm2, %v1734_v14 }
 0x122   : > { %v1738_v33 = vpop.eup %1737 }
 0x123   : > { %v1740_v16 = vpop.eup %1739 }
 0x124   : > { %1669 = vmatprep.mubr.msk.f32.mxu1 %vm1068_vm2, %v1740_v16 }
 0x125   : > { %1670 = vmatmul.mubr.msk.f32.gmra.mrb[20].mxu1 %vm1068_vm2, %v1738_v33 }
 0x126   : > { %v1742_v17 = vpop.eup %1741 }
 0x127   : > { %v1744_v40 = vpop.eup %1743 }
 0x128   : > { %1672 = vmatprep.mubr.msk.f32.mxu1 %vm1068_vm2, %v1744_v40 }
 0x129   : > { %1673 = vmatmul.mubr.msk.f32.gmra.mrb[22].mxu1 %vm1068_vm2, %v1742_v17 }
 0x1de   : > { %v1653_v19 = vpop.f32.mrb[8].mxu1 }
 0x1df   : > { %v1189_v20 = vadd.f32 %v1653_v19, %v2085_v18  ;;  %v1183_v21 = vpop.f32.mrb[9].mxu1 }
 0x1e0   : > { %v1184_v22 = vadd.f32 %v2085_v18, %v1183_v21 }
 0x1e1   : > { %1745 = vtanh.f32 %v1189_v20 }
 0x1e2   : > { %1747 = vtanh.f32 %v1184_v22  ;;  %v1656_v23 = vpop.f32.mrb[10].mxu1 }
 0x1e3   : > { %v1199_v24 = vadd.f32 %v1656_v23, %v2085_v18  ;;  %v1193_v25 = vpop.f32.mrb[11].mxu1 }
 0x1e4   : > { %v1194_v26 = vadd.f32 %v2085_v18, %v1193_v25 }
 0x1e5   : > { %1749 = vtanh.f32 %v1199_v24 }
 0x1e6   : > { %1751 = vtanh.f32 %v1194_v26  ;;  %v1659_v27 = vpop.f32.mrb[12].mxu1 }
 0x1e7   : > { %v1209_v28 = vadd.f32 %v1659_v27, %v2085_v18  ;;  %v1203_v29 = vpop.f32.mrb[13].mxu1 }
 0x1e8   : > { %v1204_v30 = vadd.f32 %v2085_v18, %v1203_v29 }
 0x1e9   : > { %1753 = vtanh.f32 %v1209_v28 }
 0x1ea   : > { %1755 = vtanh.f32 %v1204_v30  ;;  %v1662_v32 = vpop.f32.mrb[14].mxu1 }
 0x1eb   : > { %v1746_v34 = vpop.eup %1745  ;;  %v1219_v35 = vadd.f32 %v1662_v32, %v2085_v18  ;;  %v1213_v36 = vpop.f32.mrb[15].mxu1 }
 0x1ec   : > { %v1748_v37 = vpop.eup %1747  ;;  %v1214_v38 = vadd.f32 %v2085_v18, %v1213_v36  ;;  %v1286_v39 = vmul.f32 %v1746_v34, %v2096_v31 }
 0x1ed   : > { %1757 = vtanh.f32 %v1219_v35  ;;  %v1285_v7 = vmul.f32 %v1748_v37, %v2096_v31 }
 0x1ee   : > { %1759 = vtanh.f32 %v1214_v38  ;;  %v1304_v41 = vsel %vm1068_vm2, %v1286_v39, 0.0 }
 0x1ef   : > { %v1750_v6 = vpop.eup %1749  ;;  %1305 = vadd.xlane.f32.xlu0 %v1304_v41  ;;  %v1301_v47 = vsel %vm1068_vm2, %v1285_v7, 0.0 }
 0x1f0   : > { %v1752_v42 = vpop.eup %1751  ;;  %v1665_v43 = vpop.f32.mrb[16].mxu1  ;;  %v1288_v44 = vmul.f32 %v1750_v6, %v2096_v31 }
 0x1f1   : > { %v1229_v45 = vadd.f32 %v1665_v43, %v2085_v18  ;;  %v1223_v46 = vpop.f32.mrb[17].mxu1  ;;  %v1287_v49 = vmul.f32 %v1752_v42, %v2096_v31 }
 0x1f2   : > { %v1224_v8 = vadd.f32 %v2085_v18, %v1223_v46  ;;  %v1310_v48 = vsel %vm1068_vm2, %v1288_v44, 0.0 }
 0x1f3   : > { %v1754_v50 = vpop.eup %1753  ;;  %1761 = vtanh.f32 %v1229_v45  ;;  %1302 = vadd.xlane.f32.xlu0 %v1301_v47  ;;  %1311 = vadd.xlane.f32.xlu1 %v1310_v48  ;;  %v1307_v57 = vsel %vm1068_vm2, %v1287_v49, 0.0 }
 0x1f4   : > { %v1756_v51 = vpop.eup %1755  ;;  %1763 = vtanh.f32 %v1224_v8  ;;  %v1668_v52 = vpop.f32.mrb[18].mxu1  ;;  %v1290_v58 = vmul.f32 %v1754_v50, %v2096_v31 }
 0x1f5   : > { %v1239_v53 = vadd.f32 %v1668_v52, %v2085_v18  ;;  %v1233_v54 = vpop.f32.mrb[19].mxu1  ;;  %v1289_v55 = vmul.f32 %v1756_v51, %v2096_v31 }
 0x1f6   : > { %v1234_v56 = vadd.f32 %v2085_v18, %v1233_v54  ;;  %v1316_v3 = vsel %vm1068_vm2, %v1290_v58, 0.0 }
 0x1f7   : > { %v1758_v59 = vpop.eup %1757  ;;  %1765 = vtanh.f32 %v1239_v53  ;;  %1308 = vadd.xlane.f32.xlu1 %v1307_v57  ;;  %v1313_v60 = vsel %vm1068_vm2, %v1289_v55, 0.0 }
 0x1f8   : > { %v1760_v61 = vpop.eup %1759  ;;  %1767 = vtanh.f32 %v1234_v56  ;;  %1314 = vadd.xlane.f32.xlu0 %v1313_v60  ;;  %v1671_v62 = vpop.f32.mrb[20].mxu1  ;;  %v1292_v4 = vmul.f32 %v1758_v59, %v2096_v31 }
 0x1f9   : > { %v1249_v63 = vadd.f32 %v1671_v62, %v2085_v18  ;;  %v1243_v0 = vpop.f32.mrb[21].mxu1  ;;  %v1291_v1 = vmul.f32 %v1760_v61, %v2096_v31 }
 0x1fa   : > { %v1244_v2 = vadd.f32 %v2085_v18, %v1243_v0  ;;  %v1322_v15 = vsel %vm1068_vm2, %v1292_v4, 0.0 }
 0x1fb   : > { %1769 = vtanh.f32 %v1249_v63  ;;  %1317 = vadd.xlane.f32.xlu1 %v1316_v3  ;;  %v1319_v5 = vsel %vm1068_vm2, %v1291_v1, 0.0 }
 0x1fc   : > { %1771 = vtanh.f32 %v1244_v2  ;;  %1320 = vadd.xlane.f32.xlu0 %v1319_v5  ;;  %v1674_v9 = vpop.f32.mrb[22].mxu1 }
 0x1fd   : > { %v1762_v10 = vpop.eup %1761  ;;  %v1259_v11 = vadd.f32 %v1674_v9, %v2085_v18  ;;  %v1253_v12 = vpop.f32.mrb[23].mxu1 }
 0x1fe   : > { %v1764_v13 = vpop.eup %1763  ;;  %v1254_v14 = vadd.f32 %v2085_v18, %v1253_v12  ;;  %v1294_v33 = vmul.f32 %v1762_v10, %v2096_v31 }
 0x1ff   : > { %1773 = vtanh.f32 %v1259_v11  ;;  %1323 = vadd.xlane.f32.xlu1 %v1322_v15  ;;  %v1293_v16 = vmul.f32 %v1764_v13, %v2096_v31 }
 0x200   : > { %1775 = vtanh.f32 %v1254_v14  ;;  %v1328_v20 = vsel %vm1068_vm2, %v1294_v33, 0.0 }
 0x201   : > { %v1766_v17 = vpop.eup %1765  ;;  %v1325_v40 = vsel %vm1068_vm2, %v1293_v16, 0.0 }
 0x202   : > { %v1768_v19 = vpop.eup %1767  ;;  %1326 = vadd.xlane.f32.xlu0 %v1325_v40  ;;  %v1296_v21 = vmul.f32 %v1766_v17, %v2096_v31 }
 0x203   : > { %1329 = vadd.xlane.f32.xlu1 %v1328_v20  ;;  %v1295_v18 = vmul.f32 %v1768_v19, %v2096_v31 }
 0x204   : > { %v1334_v25 = vsel %vm1068_vm2, %v1296_v21, 0.0 }
 0x205   : > { %v1770_v22 = vpop.eup %1769  ;;  %v1331_v23 = vsel %vm1068_vm2, %v1295_v18, 0.0 }
 0x206   : > { %v1772_v24 = vpop.eup %1771  ;;  %1332 = vadd.xlane.f32.xlu0 %v1331_v23  ;;  %v1298_v26 = vmul.f32 %v1770_v22, %v2096_v31 }
 0x207   : > { %1335 = vadd.xlane.f32.xlu1 %v1334_v25  ;;  %v1297_v27 = vmul.f32 %v1772_v24, %v2096_v31 }
 0x208   : > { %v1340_v32 = vsel %vm1068_vm2, %v1298_v26, 0.0 }
 0x209   : > { %v1774_v28 = vpop.eup %1773  ;;  %v1337_v29 = vsel %vm1068_vm2, %v1297_v27, 0.0 }
 0x20a   : > { %v1776_v30 = vpop.eup %1775  ;;  %1338 = vadd.xlane.f32.xlu0 %v1337_v29  ;;  %v1300_v34 = vmul.f32 %v1774_v28, %v2096_v31 }
 0x20b   : > { %1341 = vadd.xlane.f32.xlu1 %v1340_v32  ;;  %v1299_v35 = vmul.f32 %v1776_v30, %v2096_v31 }
 0x20c   : > { %v1346_v37 = vsel %vm1068_vm2, %v1300_v34, 0.0 }
 0x20d   : > { %v1343_v36 = vsel %vm1068_vm2, %v1299_v35, 0.0 }
 0x20e   : > { %1344 = vadd.xlane.f32.xlu0 %v1343_v36 }
 0x20f   : > { %1347 = vadd.xlane.f32.xlu1 %v1346_v37 }
 0x27c   : > { %v1306_v31 = vpop.xlane.xlu0 %1305 }
 0x27d   : > { %1351 = vst.msk [vmem:[%s2144_s28 + $0x8] sm:$0xff] %vm1349_vm3, %v1306_v31 }
 0x280   : > { %v1303_v38 = vpop.xlane.xlu0 %1302  ;;  %v1312_v39 = vpop.xlane.xlu1 %1311 }
 0x281   : > { %1350 = vst.msk [vmem:[%s2144_s28] sm:$0xff] %vm1349_vm3, %v1303_v38  ;;  %1353 = vst.msk [vmem:[%s2144_s28 + $0x18] sm:$0xff] %vm1349_vm3, %v1312_v39 }
 0x284   : > { %v1309_v41 = vpop.xlane.xlu1 %1308 }
 0x285   : > { %1352 = vst.msk [vmem:[%s2144_s28 + $0x10] sm:$0xff] %vm1349_vm3, %v1309_v41  ;;  %v1315_v7 = vpop.xlane.xlu0 %1314 }
 0x286   : > { %1354 = vst.msk [vmem:[%s2144_s28 + $0x20] sm:$0xff] %vm1349_vm3, %v1315_v7 }
 0x288   : > { %v1318_v6 = vpop.xlane.xlu1 %1317 }
 0x289   : > { %1355 = vst.msk [vmem:[%s2144_s28 + $0x28] sm:$0xff] %vm1349_vm3, %v1318_v6  ;;  %v1321_v42 = vpop.xlane.xlu0 %1320 }
 0x28a   : > { %1356 = vst.msk [vmem:[%s2144_s28 + $0x30] sm:$0xff] %vm1349_vm3, %v1321_v42 }
 0x28c   : > { %v1324_v43 = vpop.xlane.xlu1 %1323 }
 0x28d   : > { %1357 = vst.msk [vmem:[%s2144_s28 + $0x38] sm:$0xff] %vm1349_vm3, %v1324_v43 }
 0x28f   : > { %v1327_v44 = vpop.xlane.xlu0 %1326 }
 0x290   : > { %1358 = vst.msk [vmem:[%s2144_s28 + $0x40] sm:$0xff] %vm1349_vm3, %v1327_v44  ;;  %v1330_v45 = vpop.xlane.xlu1 %1329 }
 0x291   : > { %1359 = vst.msk [vmem:[%s2144_s28 + $0x48] sm:$0xff] %vm1349_vm3, %v1330_v45 }
 0x293   : > { %v1333_v46 = vpop.xlane.xlu0 %1332 }
 0x294   : > { %1360 = vst.msk [vmem:[%s2144_s28 + $0x50] sm:$0xff] %vm1349_vm3, %v1333_v46  ;;  %v1336_v8 = vpop.xlane.xlu1 %1335 }
 0x295   : > { %1361 = vst.msk [vmem:[%s2144_s28 + $0x58] sm:$0xff] %vm1349_vm3, %v1336_v8 }
 0x297   : > { %v1339_v47 = vpop.xlane.xlu0 %1338 }
 0x298   : > { %1362 = vst.msk [vmem:[%s2144_s28 + $0x60] sm:$0xff] %vm1349_vm3, %v1339_v47  ;;  %v1342_v48 = vpop.xlane.xlu1 %1341 }
 0x299   : > { %1363 = vst.msk [vmem:[%s2144_s28 + $0x68] sm:$0xff] %vm1349_vm3, %v1342_v48 }
 0x29b   : > { %v1345_v49 = vpop.xlane.xlu0 %1344 }
 0x29c   : > { %1364 = vst.msk [vmem:[%s2144_s28 + $0x70] sm:$0xff] %vm1349_vm3, %v1345_v49  ;;  %v1348_v50 = vpop.xlane.xlu1 %1347 }
 0x29d   : > { %1365 = vst.msk [vmem:[%s2144_s28 + $0x78] sm:$0xff] %vm1349_vm3, %v1348_v50 }
 0x29e PF: > { %s22_s21 = sadd.s32 1, %s1783_s21  }
 0x29f   : > { %p19_p4 = scmp.ge.s32.totalorder %s22_s21, 5  }
 0x2a1   :  { %21 = sbr.rel (!%p19_p4) target bundleno = 1 (0x1), region = 101 }

</bundles_post_ra>
